<compile_context>
chip_gen: v7x
topology: tpu7x:2x2x1
jax: 0.10.0
libtpu: 0.0.40
codegen_flags: <defaults>
</compile_context>

<pallas_src>
import jax
import jax.numpy as jnp
from jax.experimental import pallas as pl
from jax.experimental.pallas import tpu as pltpu


def _round_up(a, m):
    return (a + m - 1) // m * m


def _make_kernel(vocab_offsets, v_total, d_emb, num_dim, tb):
    n_cat = len(vocab_offsets)

    def kernel(cate_ref, num_ref, stacked_ref, w1_ref, b1_ref, w2_ref, b2_ref,
               o_ref):
        cate = cate_ref[...]                                   # (TB, n_cat) i32
        iota = jax.lax.broadcasted_iota(jnp.int32, (tb, v_total), 1)

        # Combined one-hot over the concatenated vocabularies. The per-feature
        # vocab ranges are disjoint, so the per-feature one-hots simply sum.
        onehot = jnp.zeros((tb, v_total), jnp.float32)
        for i in range(n_cat):
            ids = cate[:, i:i + 1] + vocab_offsets[i]          # (TB, 1)
            onehot = onehot + (ids == iota).astype(jnp.float32)

        # One MXU matmul performs every embedding lookup AND the torch.cat of
        # embeddings: `stacked` is the block-diagonal stack of all tables.
        emb = jnp.dot(onehot, stacked_ref[...],
                      preferred_element_type=jnp.float32)      # (TB, D_emb)

        # First linear layer; concat with num_inputs folded into two partial
        # matmuls over static row-slices of W1 (no in-kernel lane concat).
        w1 = w1_ref[...]
        h = jnp.dot(emb, w1[:d_emb, :], preferred_element_type=jnp.float32)
        h = h + jnp.dot(num_ref[...], w1[d_emb:d_emb + num_dim, :],
                        preferred_element_type=jnp.float32)
        h = jnp.maximum(h + b1_ref[...], 0.0)                  # ReLU 1

        out = jnp.dot(h, w2_ref[...], preferred_element_type=jnp.float32)
        o_ref[...] = jnp.maximum(out + b2_ref[...], 0.0).astype(o_ref.dtype)

    return kernel


def embed_nn_forward(cate_inputs, num_inputs, tables, w1, b1, w2, b2,
                     *, block_batch=256):
    """cate_inputs: (B, n_cat) int, num_inputs: (B, num_dim) f32,
    tables: list of (vocab_i, dim_i) f32, w1: (input_dim, 64), b1: (1, 64),
    w2: (64, 32), b2: (1, 32)  ->  (B, 32) f32."""
    B, n_cat = cate_inputs.shape
    num_dim = int(num_inputs.shape[1])
    emb_dims = tuple(int(t.shape[1]) for t in tables)
    vocabs = tuple(int(t.shape[0]) for t in tables)
    d_emb = int(sum(emb_dims))
    v_total = int(sum(vocabs))
    h1 = int(w1.shape[1])
    h2 = int(w2.shape[1])
    vocab_offsets = tuple(int(sum(vocabs[:i])) for i in range(n_cat))

    # Block-diagonal stacked embedding table (pure layout: zero-pad + concat).
    blocks, col = [], 0
    for i, t in enumerate(tables):
        blocks.append(jnp.pad(t.astype(jnp.float32),
                              ((0, 0), (col, d_emb - col - emb_dims[i]))))
        col += emb_dims[i]
    stacked = jnp.concatenate(blocks, axis=0)                  # (V_total, D_emb)

    # Sublane-aligned batch tile; pad ragged batches and slice the result back.
    tb = max(8, min(_round_up(int(block_batch), 8), _round_up(B, 8)))
    b_pad = _round_up(B, tb)
    cate = cate_inputs.astype(jnp.int32)
    num = num_inputs.astype(jnp.float32)
    if b_pad != B:
        cate = jnp.pad(cate, ((0, b_pad - B), (0, 0)))   # id 0 is always valid
        num = jnp.pad(num, ((0, b_pad - B), (0, 0)))
    grid = (b_pad // tb,)

    # Scoped-VMEM budget from the (8,128)-padded footprint, with headroom,
    # capped so a tile tuned on v5e/v6e still fits v7x's 64 MiB VMEM.
    def _pad_bytes(r, c):
        return 4 * _round_up(r, 8) * _round_up(c, 128)

    tile_bytes = 2 * (_pad_bytes(tb, n_cat) + _pad_bytes(tb, num_dim)
                      + _pad_bytes(tb, h2))                    # double-buffered
    param_bytes = (_pad_bytes(v_total, d_emb) + _pad_bytes(d_emb + num_dim, h1)
                   + _pad_bytes(h1, h2) + _pad_bytes(1, h1) + _pad_bytes(1, h2))
    vmem_limit = min(max(2 * tile_bytes + 2 * param_bytes + (4 << 20), 16 << 20),
                     48 << 20)

    kernel = _make_kernel(vocab_offsets, v_total, d_emb, num_dim, tb)

    in_specs = [
        pl.BlockSpec((tb, n_cat), lambda i: (i, 0)),            # categorical ids
        pl.BlockSpec((tb, num_dim), lambda i: (i, 0)),          # numeric feats
        pl.BlockSpec((v_total, d_emb), lambda i: (0, 0)),       # stacked tables
        pl.BlockSpec((d_emb + num_dim, h1), lambda i: (0, 0)),  # W1
        pl.BlockSpec((1, h1), lambda i: (0, 0)),                # b1
        pl.BlockSpec((h1, h2), lambda i: (0, 0)),               # W2
        pl.BlockSpec((1, h2), lambda i: (0, 0)),                # b2
    ]

    out = pl.pallas_call(
        kernel,
        out_shape=jax.ShapeDtypeStruct((b_pad, h2), jnp.float32),
        grid=grid,
        in_specs=in_specs,
        out_specs=pl.BlockSpec((tb, h2), lambda i: (i, 0)),
        compiler_params=pltpu.CompilerParams(
            dimension_semantics=("parallel",),
            vmem_limit_bytes=int(vmem_limit),
        ),
    )(cate, num, stacked, w1, b1, w2, b2)

    return out[:B] if b_pad != B else out


def init_params(key, embedding_input, embedding_dim, num_dim, hidden=64, out=32):
    """Deterministic init mimicking nn.Embedding (N(0,1)) and nn.Linear
    (uniform(-1/sqrt(fan_in), 1/sqrt(fan_in))). Linear weights stored
    pre-transposed as (in, out)."""
    n_cat = len(embedding_input)
    keys = jax.random.split(key, n_cat + 4)
    tables = [
        jax.random.normal(keys[i], (embedding_input[i], embedding_dim[i]),
                          jnp.float32)
        for i in range(n_cat)
    ]
    input_dim = int(sum(embedding_dim) + num_dim)
    kw1, kb1, kw2, kb2 = keys[n_cat:]
    bound1 = 1.0 / jnp.sqrt(jnp.float32(input_dim))
    w1 = jax.random.uniform(kw1, (input_dim, hidden), jnp.float32, -bound1, bound1)
    b1 = jax.random.uniform(kb1, (1, hidden), jnp.float32, -bound1, bound1)
    bound2 = 1.0 / jnp.sqrt(jnp.float32(hidden))
    w2 = jax.random.uniform(kw2, (hidden, out), jnp.float32, -bound2, bound2)
    b2 = jax.random.uniform(kb2, (1, out), jnp.float32, -bound2, bound2)
    return tables, w1, b1, w2, b2


if __name__ == "__main__":
    key = jax.random.PRNGKey(0)
    k_cate, k_num, k_p = jax.random.split(key, 3)

    # Small shapes consistent with the module: 3 categorical features,
    # embedding dims summing to 32, 16 numeric features.
    embedding_input = (11, 7, 5)     # vocab sizes
    embedding_dim = (8, 8, 16)       # per-feature embedding widths
    num_dim = 16
    B = 20                           # deliberately not a tile multiple

    cate_keys = jax.random.split(k_cate, len(embedding_input))
    cate_cols = [
        jax.random.randint(cate_keys[i], (B,), 0, embedding_input[i],
                           dtype=jnp.int32)
        for i in range(len(embedding_input))
    ]
    cate_inputs = jnp.stack(cate_cols, axis=1)                  # (B, 3) int32
    num_inputs = jax.random.normal(k_num, (B, num_dim), jnp.float32)

    tables, w1, b1, w2, b2 = init_params(k_p, embedding_input, embedding_dim,
                                         num_dim)

    # TODO(synk): embedding_file pickle loading / freezing pretrained embeddings
    # is host-side init (not forward compute) and is not reproduced here.

    out = embed_nn_forward(cate_inputs, num_inputs, tables, w1, b1, w2, b2,
                           block_batch=8)     # grid of 3 tiles (one padded)
    out = jax.block_until_ready(out)

    # Reference in plain JAX (same math as the PyTorch module).
    embs = [tables[i][cate_inputs[:, i]] for i in range(len(tables))]
    x = jnp.concatenate(embs + [num_inputs], axis=1)
    h_ref = jnp.maximum(x @ w1 + b1, 0.0)
    ref = jnp.maximum(h_ref @ w2 + b2, 0.0)

    assert out.shape == (B, 32)
    assert jnp.allclose(out, ref, atol=1e-5, rtol=1e-5)

    print("KERNEL_OK")
</pallas_src>

<mosaic_0001>
module attributes {stable_mosaic.version = 11 : i64} {
  func.func @kernel(%arg0: i32, %arg1: memref<8x3xi32, #tpu.memory_space<vmem>>, %arg2: memref<8x16xf32, #tpu.memory_space<vmem>>, %arg3: memref<23x32xf32, #tpu.memory_space<vmem>>, %arg4: memref<48x64xf32, #tpu.memory_space<vmem>>, %arg5: memref<1x64xf32, #tpu.memory_space<vmem>>, %arg6: memref<64x32xf32, #tpu.memory_space<vmem>>, %arg7: memref<1x32xf32, #tpu.memory_space<vmem>>, %arg8: memref<8x32xf32, #tpu.memory_space<vmem>>) attributes {dimension_semantics = [#tpu.dimension_semantics<parallel>], iteration_bounds = array<i64: 3>, scalar_prefetch = 0 : i64, scratch_operands = 0 : i64, tpu.core_type = #tpu.core_type<tc>, window_params = [{transform_indices = @transform_0, window_bounds = array<i64: 8, 3>}, {transform_indices = @transform_1, window_bounds = array<i64: 8, 16>}, {pipeline_mode = #tpu.pipeline_mode<synchronous>, transform_indices = @transform_2, window_bounds = array<i64: 23, 32>}, {pipeline_mode = #tpu.pipeline_mode<synchronous>, transform_indices = @transform_3, window_bounds = array<i64: 48, 64>}, {pipeline_mode = #tpu.pipeline_mode<synchronous>, transform_indices = @transform_4, window_bounds = array<i64: 1, 64>}, {pipeline_mode = #tpu.pipeline_mode<synchronous>, transform_indices = @transform_5, window_bounds = array<i64: 64, 32>}, {pipeline_mode = #tpu.pipeline_mode<synchronous>, transform_indices = @transform_6, window_bounds = array<i64: 1, 32>}, {transform_indices = @transform_7, window_bounds = array<i64: 8, 32>}]} {
    %c0 = arith.constant 0 : index
    %c0_0 = arith.constant 0 : index
    %0 = vector.load %arg1[%c0, %c0_0] : memref<8x3xi32, #tpu.memory_space<vmem>>, vector<8x3xi32>
    %1 = tpu.iota {dimensions = array<i32: 1>} : vector<8x23xi32>
    %cst = arith.constant 0.000000e+00 : f32
    %2 = vector.broadcast %cst : f32 to vector<8x23xf32>
    %3 = vector.extract_strided_slice %0 {offsets = [0, 0], sizes = [8, 1], strides = [1, 1]} : vector<8x3xi32> to vector<8x1xi32>
    %c0_i32 = arith.constant 0 : i32
    %4 = vector.broadcast %c0_i32 : i32 to vector<8x1xi32>
    %5 = arith.addi %3, %4 : vector<8x1xi32>
    %6 = vector.broadcast %5 : vector<8x1xi32> to vector<8x23xi32>
    %7 = arith.cmpi eq, %6, %1 : vector<8x23xi32>
    %8 = arith.extui %7 : vector<8x23xi1> to vector<8x23xi32>
    %9 = arith.sitofp %8 : vector<8x23xi32> to vector<8x23xf32>
    %10 = arith.addf %2, %9 : vector<8x23xf32>
    %11 = vector.extract_strided_slice %0 {offsets = [0, 1], sizes = [8, 1], strides = [1, 1]} : vector<8x3xi32> to vector<8x1xi32>
    %c11_i32 = arith.constant 11 : i32
    %12 = vector.broadcast %c11_i32 : i32 to vector<8x1xi32>
    %13 = arith.addi %11, %12 : vector<8x1xi32>
    %14 = vector.broadcast %13 : vector<8x1xi32> to vector<8x23xi32>
    %15 = arith.cmpi eq, %14, %1 : vector<8x23xi32>
    %16 = arith.extui %15 : vector<8x23xi1> to vector<8x23xi32>
    %17 = arith.sitofp %16 : vector<8x23xi32> to vector<8x23xf32>
    %18 = arith.addf %10, %17 : vector<8x23xf32>
    %19 = vector.extract_strided_slice %0 {offsets = [0, 2], sizes = [8, 1], strides = [1, 1]} : vector<8x3xi32> to vector<8x1xi32>
    %c18_i32 = arith.constant 18 : i32
    %20 = vector.broadcast %c18_i32 : i32 to vector<8x1xi32>
    %21 = arith.addi %19, %20 : vector<8x1xi32>
    %22 = vector.broadcast %21 : vector<8x1xi32> to vector<8x23xi32>
    %23 = arith.cmpi eq, %22, %1 : vector<8x23xi32>
    %24 = arith.extui %23 : vector<8x23xi1> to vector<8x23xi32>
    %25 = arith.sitofp %24 : vector<8x23xi32> to vector<8x23xf32>
    %26 = arith.addf %18, %25 : vector<8x23xf32>
    %c0_1 = arith.constant 0 : index
    %c0_2 = arith.constant 0 : index
    %27 = vector.load %arg3[%c0_1, %c0_2] : memref<23x32xf32, #tpu.memory_space<vmem>>, vector<23x32xf32>
    %cst_3 = arith.constant dense<0.000000e+00> : vector<8x32xf32>
    %28 = tpu.matmul %26, %27, %cst_3 {dimension_numbers = #tpu.dot_dimension_numbers<[1], [0], [0], [1], [0, 0, 1, 1], [], []>} : vector<8x23xf32>, vector<23x32xf32>, vector<8x32xf32> -> vector<8x32xf32>
    %c0_4 = arith.constant 0 : index
    %c0_5 = arith.constant 0 : index
    %29 = vector.load %arg4[%c0_4, %c0_5] : memref<48x64xf32, #tpu.memory_space<vmem>>, vector<48x64xf32>
    %30 = vector.extract_strided_slice %29 {offsets = [0, 0], sizes = [32, 64], strides = [1, 1]} : vector<48x64xf32> to vector<32x64xf32>
    %cst_6 = arith.constant dense<0.000000e+00> : vector<8x64xf32>
    %31 = tpu.matmul %28, %30, %cst_6 {dimension_numbers = #tpu.dot_dimension_numbers<[1], [0], [0], [1], [0, 0, 1, 1], [], []>} : vector<8x32xf32>, vector<32x64xf32>, vector<8x64xf32> -> vector<8x64xf32>
    %c0_7 = arith.constant 0 : index
    %c0_8 = arith.constant 0 : index
    %32 = vector.load %arg2[%c0_7, %c0_8] : memref<8x16xf32, #tpu.memory_space<vmem>>, vector<8x16xf32>
    %33 = vector.extract_strided_slice %29 {offsets = [32, 0], sizes = [16, 64], strides = [1, 1]} : vector<48x64xf32> to vector<16x64xf32>
    %cst_9 = arith.constant dense<0.000000e+00> : vector<8x64xf32>
    %34 = tpu.matmul %32, %33, %cst_9 {dimension_numbers = #tpu.dot_dimension_numbers<[1], [0], [0], [1], [0, 0, 1, 1], [], []>} : vector<8x16xf32>, vector<16x64xf32>, vector<8x64xf32> -> vector<8x64xf32>
    %35 = arith.addf %31, %34 : vector<8x64xf32>
    %c0_10 = arith.constant 0 : index
    %c0_11 = arith.constant 0 : index
    %36 = vector.load %arg5[%c0_10, %c0_11] : memref<1x64xf32, #tpu.memory_space<vmem>>, vector<1x64xf32>
    %37 = vector.broadcast %36 : vector<1x64xf32> to vector<8x64xf32>
    %38 = arith.addf %35, %37 : vector<8x64xf32>
    %cst_12 = arith.constant 0.000000e+00 : f32
    %39 = vector.broadcast %cst_12 : f32 to vector<8x64xf32>
    %40 = arith.maximumf %38, %39 : vector<8x64xf32>
    %c0_13 = arith.constant 0 : index
    %c0_14 = arith.constant 0 : index
    %41 = vector.load %arg6[%c0_13, %c0_14] : memref<64x32xf32, #tpu.memory_space<vmem>>, vector<64x32xf32>
    %cst_15 = arith.constant dense<0.000000e+00> : vector<8x32xf32>
    %42 = tpu.matmul %40, %41, %cst_15 {dimension_numbers = #tpu.dot_dimension_numbers<[1], [0], [0], [1], [0, 0, 1, 1], [], []>} : vector<8x64xf32>, vector<64x32xf32>, vector<8x32xf32> -> vector<8x32xf32>
    %c0_16 = arith.constant 0 : index
    %c0_17 = arith.constant 0 : index
    %43 = vector.load %arg7[%c0_16, %c0_17] : memref<1x32xf32, #tpu.memory_space<vmem>>, vector<1x32xf32>
    %44 = vector.broadcast %43 : vector<1x32xf32> to vector<8x32xf32>
    %45 = arith.addf %42, %44 : vector<8x32xf32>
    %cst_18 = arith.constant 0.000000e+00 : f32
    %46 = vector.broadcast %cst_18 : f32 to vector<8x32xf32>
    %47 = arith.maximumf %45, %46 : vector<8x32xf32>
    %c0_19 = arith.constant 0 : index
    %c0_20 = arith.constant 0 : index
    %48 = vector.load %arg8[%c0_19, %c0_20] : memref<8x32xf32, #tpu.memory_space<vmem>>, vector<8x32xf32>
    tpu.vector_store %arg8[%c0_19, %c0_20], %47 {strides = array<i32>} : memref<8x32xf32, #tpu.memory_space<vmem>>, vector<8x32xf32>,
    return
  }
  func.func @transform_0(%arg0: i32) -> (i32, i32) {
    %c0_i32 = arith.constant 0 : i32
    %c0_i32_0 = arith.constant 0 : i32
    return %arg0, %c0_i32 : i32, i32
  }
  func.func @transform_1(%arg0: i32) -> (i32, i32) {
    %c0_i32 = arith.constant 0 : i32
    %c0_i32_0 = arith.constant 0 : i32
    return %arg0, %c0_i32 : i32, i32
  }
  func.func @transform_2(%arg0: i32) -> (i32, i32) {
    %c0_i32 = arith.constant 0 : i32
    %c0_i32_0 = arith.constant 0 : i32
    %c0_i32_1 = arith.constant 0 : i32
    return %c0_i32, %c0_i32_0 : i32, i32
  }
  func.func @transform_3(%arg0: i32) -> (i32, i32) {
    %c0_i32 = arith.constant 0 : i32
    %c0_i32_0 = arith.constant 0 : i32
    %c0_i32_1 = arith.constant 0 : i32
    return %c0_i32, %c0_i32_0 : i32, i32
  }
  func.func @transform_4(%arg0: i32) -> (i32, i32) {
    %c0_i32 = arith.constant 0 : i32
    %c0_i32_0 = arith.constant 0 : i32
    %c0_i32_1 = arith.constant 0 : i32
    return %c0_i32, %c0_i32_0 : i32, i32
  }
  func.func @transform_5(%arg0: i32) -> (i32, i32) {
    %c0_i32 = arith.constant 0 : i32
    %c0_i32_0 = arith.constant 0 : i32
    %c0_i32_1 = arith.constant 0 : i32
    return %c0_i32, %c0_i32_0 : i32, i32
  }
  func.func @transform_6(%arg0: i32) -> (i32, i32) {
    %c0_i32 = arith.constant 0 : i32
    %c0_i32_0 = arith.constant 0 : i32
    %c0_i32_1 = arith.constant 0 : i32
    return %c0_i32, %c0_i32_0 : i32, i32
  }
  func.func @transform_7(%arg0: i32) -> (i32, i32) {
    %c0_i32 = arith.constant 0 : i32
    %c0_i32_0 = arith.constant 0 : i32
    return %arg0, %c0_i32 : i32, i32
  }
}

</mosaic_0001>

<bundles_post_ra>
// kernel: tpu_custom_call.1
= control target key start
LH: loop header
LB: loop body
LE: loop exit
PB: predicated region body
PF: predicated region fallthrough
CT: control target
= control target key end

     0   :  { %12 = vsyncpa [#allocation3], 0  ;;  %s1191_s0 = inlined_call_operand.vmem [shape: s32[24,3], index: 0, kind: input, shape index: {}]   ;;  %s1192_s1 = inlined_call_operand.vmem [shape: f32[24,16], index: 1, kind: input, shape index: {}]   ;;  %s1193_s2 = inlined_call_operand.vmem [shape: f32[23,32], index: 2, kind: input, shape index: {}]   ;;  %s1194_s3 = inlined_call_operand.vmem [shape: f32[48,64], index: 3, kind: input, shape index: {}]   ;;  %s1195_s4 = inlined_call_operand.vmem [shape: f32[1,64], index: 4, kind: input, shape index: {}]   ;;  %s1196_s5 = inlined_call_operand.vmem [shape: f32[64,32], index: 5, kind: input, shape index: {}]   ;;  %s1197_s6 = inlined_call_operand.vmem [shape: f32[1,32], index: 6, kind: input, shape index: {}]   ;;  %s1198_s7 = inlined_call_operand.hbm [shape: f32[24,32], index: 7, kind: output, shape index: {}]  }
   0x1   :  { %14 = vsyncpa [#allocation3 + $0x1], 0  ;;  %s1010_s24 = smov 0   ;;  %s1012_s25 = smov 0  }
   0x2   :  { %s1014_s26 = smov 0   ;;  %s1016_s27 = smov 0  }
   0x3 LB: > { %s1031_s28 = sadd.s32 4294967295, %s961_s27   ;;  %s738_s29 = sadd.s32 4294967294, %s961_s27   ;;  %s961_s27 = sphi %s1016_s27, %s1204_s27   ;;  %s957_s26 = sphi %s1014_s26, %s1203_s26   ;;  %s953_s25 = sphi %s1012_s25, %s1202_s25   ;;  %s949_s24 = sphi %s1010_s24, %s1201_s24  }
   0x4   : > { %s1035_s30 = sadd.s32 1, %s961_s27   ;;  %s184_s8 = sadd.s32 1, %s957_s26 }
   0x5   : > { %s181_s9 = ssub.s32 %s961_s27, %s1035_s30  ;;  %p194_p0 = scmp.ne.s32.totalorder %s957_s26, %s953_s25 }
   0x6   : > { %p182_p1 = scmp.eq.s32.totalorder %s181_s9, 0  ;;  %p195_p2 = scmp.eq.s32.totalorder %s1031_s28, 2 }
   0x7   : > { %p200_p3 = scmp.ne.s32.totalorder %s953_s25, %s949_s24  ;;  %p201_p4 = scmp.eq.s32.totalorder %s738_s29, 2 }
   0x8   : > { %s1046_s10 = scalar_select %p182_p1, %s957_s26, %s184_s8  }
   0x9   : > { %p1048_p5 = por %p195_p2, %p194_p0  ;;  %p1052_p6 = por %p201_p4, %p200_p3 }
   0xa   : > { %p741_p7 = scmp.ge.s32.totalorder %s961_s27, 1  ;;  %p248_p8 = scmp.lt.s32.totalorder %s961_s27, 4 }
   0xc   : > { %p249_p9 = pnand %p741_p7, %p248_p8 }
   0xd   : > { %p283_p10 = scmp.lt.s32.totalorder (!%p249_p9), %s1031_s28, 2  ;;  %v963_v0 = vmov (!%p249_p9), 0   ;;  %v964_v1 = vmov (!%p249_p9), 2   ;;  %v317_v5 = vld [vmem:[%s1193_s2] sm:$0xff] (!%p249_p9)  ;;  %v318_v6 = vld [vmem:[%s1193_s2 + $0x8] sm:$0xff] (!%p249_p9)  ;;  %v965_v7 = vmov (!%p249_p9), 1   ;;  %v292_v12 = vlaneseq (!%p249_p9) }
   0xe   : > { %252 = sbr.rel (%p249_p9) target bundleno = 825 (0x339), region = 48  ;;  %895 = vset.pattern.permute.xlu0 (!%p249_p9), %v963_v0  ;;  %897 = vset.pattern.permute.xlu1 (!%p249_p9), %v964_v1  ;;  %v827_v8 = vpack.c.bf16 (!%p249_p9), %v318_v6, %v317_v5  ;;  %v966_v9 = vmov (!%p249_p9), 0.0|0.0   ;;  %v967_v10 = vmov (!%p249_p9), 0.0   ;;  %v319_v11 = vld [vmem:[%s1193_s2 + $0x10] sm:$0x7f] (!%p249_p9)  ;;  %vm324_vm0 = vcmask (!%p249_p9), 1046528  }
   0xf   : > { %826 = vmatprep.subr.bf16.mxu1 (!%p249_p9), %v966_v9  ;;  %838 = vmatprep.subr.bf16.mxu0 (!%p249_p9), %v966_v9  ;;  %vm968_vm1 = vmmov (!%p249_p9), 0   ;;  %v293_v13 = vand.u32 (!%p249_p9), 127, %v292_v12  ;;  %v402_v17 = vld [vmem:[%s1194_s3 + $0x20] sm:$0xff] (!%p249_p9)  ;;  %v403_v18 = vld [vmem:[%s1194_s3 + $0x28] sm:$0xff] (!%p249_p9)  ;;  %vm320_vm5 = vcmask (!%p249_p9), 187392   ;;  %vm405_vm6 = vcmask (!%p249_p9), 130048  }
  0x10   : > { %828 = vmatpush3.bf16.msra.mxu1 (!%p249_p9), %v827_v8  ;;  %786 = vmatprep.mubr.msk.f32.mxu1 (!%p249_p9), %vm968_vm1, %v967_v10  ;;  %v830_v23 = vpack.c.bf16 (!%p249_p9), %v403_v18, %v402_v17  ;;  %v398_v25 = vld [vmem:[%s1194_s3] sm:$0xff] (!%p249_p9)  ;;  %v399_v26 = vld [vmem:[%s1194_s3 + $0x8] sm:$0xff] (!%p249_p9)  ;;  %v400_v29 = vld [vmem:[%s1194_s3 + $0x10] sm:$0xff] (!%p249_p9)  ;;  %vm479_vm7 = vcmask (!%p249_p9), 261120   ;;  %vm577_vm8 = vcmask (!%p249_p9), 523264   ;;  %s756_s21 = sshll.u32 (!%p249_p9), %s1031_s28, 7 }
  0x11   : > { %784 = vmatprep.subr.mxu1 (!%p249_p9), %v967_v10  ;;  %823 = vmatprep.mubr.msk.f32.mxu0 (!%p249_p9), %vm968_vm1, %v967_v10  ;;  %v833_v28 = vpack.c.bf16 (!%p249_p9), %v399_v26, %v398_v25  ;;  %v401_v30 = vld [vmem:[%s1194_s3 + $0x18] sm:$0xff] (!%p249_p9)  ;;  %v562_v32 = vld [vmem:[%s1196_s5] sm:$0xff] (!%p249_p9)  ;;  %v563_v33 = vld [vmem:[%s1196_s5 + $0x8] sm:$0xff] (!%p249_p9)  ;;  %s1148_s29 = scalar_lea.hbm (!%p249_p9), %s1198_s7, %s756_s21 }
  0x12   : > { %v836_v31 = vpack.c.bf16 (!%p249_p9), %v401_v30, %v400_v29  ;;  %v839_v34 = vpack.c.bf16 (!%p249_p9), %v563_v33, %v562_v32  ;;  %v564_v35 = vld [vmem:[%s1196_s5 + $0x10] sm:$0xff] (!%p249_p9)  ;;  %v565_v36 = vld [vmem:[%s1196_s5 + $0x18] sm:$0xff] (!%p249_p9)  ;;  %v566_v42 = vld [vmem:[%s1196_s5 + $0x20] sm:$0xff] (!%p249_p9) }
  0x13   : > { %v842_v37 = vpack.c.bf16 (!%p249_p9), %v565_v36, %v564_v35  ;;  %v567_v43 = vld [vmem:[%s1196_s5 + $0x28] sm:$0xff] (!%p249_p9)  ;;  %v568_v45 = vld [vmem:[%s1196_s5 + $0x30] sm:$0xff] (!%p249_p9)  ;;  %v569_v46 = vld [vmem:[%s1196_s5 + $0x38] sm:$0xff] (!%p249_p9) }
  0x14   : > { %785 = vmatpush3.msk.msra.mxu1 (!%p249_p9), %vm324_vm0, %v319_v11  ;;  %840 = vmatpush3.bf16.msra.mxu0 (!%p249_p9), %v839_v34  ;;  %v845_v44 = vpack.c.bf16 (!%p249_p9), %v567_v43, %v566_v42  ;;  %v848_v47 = vpack.c.bf16 (!%p249_p9), %v569_v46, %v568_v45  ;;  %v752_v49 = vld [vmem:[%s1195_s4] ss:$0 sm:$0xff] (!%p249_p9) }
  0x15   : > { %s1060_s13 = scalar_select %p283_p10, %s1031_s28, 2  ;;  %829 = vmatprep.subr.bf16.mxu1 %v966_v9  ;;  %841 = vmatprep.subr.bf16.mxu0 %v966_v9  ;;  %v753_v54 = vld [vmem:[%s1197_s6] ss:$0 sm:$0xff] }
  0x16   : > { %s969_s28 = smov [#allocation2]  }
  0x17   : > { %s743_s14 = sshll.u32 %s1060_s13, 3  ;;  %s903_s15 = sshll.u32 %s969_s28, 4  ;;  %s904_s15 = int_to_ptr.vmem [resolvable:$false] %s903_s15 }
  0x18   : > { %s286_s17 = scalar_lea.vmem %s1191_s0, %s743_s14  ;;  %s290_s18 = scalar_lea.vmem %s1192_s1, %s743_s14  ;;  %843 = vmatpush3.bf16.msra.mxu0 %v842_v37 }
  0x19   : > { %v291_v2 = vld [vmem:[%s286_s17] sm:$0xff]  ;;  %844 = vmatprep.subr.bf16.mxu0 %v966_v9  ;;  %s280_s17 = sand.u32 1, %s953_s25   ;;  %s905_s16 = scalar_lea.vmem %s904_s15, 256 }
  0x1a   : > { %295 = vperm.xlu0 %895, %v291_v2   ;;  %v309_v3 = vadd.s32 18, %v291_v2  ;;  %v301_v4 = vadd.s32 11, %v291_v2  ;;  %v404_v27 = vld [vmem:[%s290_s18] sm:$0xff]  ;;  %s742_s18 = sshll.u32 %s280_s17, 3  ;;  %s654_s8 = scalar_lea.sflag [#allocation3], %s280_s17 }
  0x1b   : > { %s282_s22 = scalar_lea.vmem [#allocation2], %s742_s18 }
  0x1c   : > { %311 = vperm.xlu1 %897, %v309_v3   ;;  %846 = vmatpush3.bf16.msra.mxu0 %v845_v44  ;;  %s667_s13 = sshll.u32 %s282_s22, 4  ;;  %s1150_s13 = int_to_ptr.vmem [resolvable:$true] %s667_s13 }
  0x1d   : > { %847 = vmatprep.subr.bf16.mxu0 %v966_v9  ;;  %s899_s9 = scalar_lea.vmem %s1150_s13, 128  ;;  %p906_p0 = scmp.lt.s32.totalorder %s1150_s13, %s904_s15 }
  0x1e   : > { %896 = vset.pattern.permute.xlu0 %v965_v7  ;;  %p900_p11 = scmp.ne.s32.totalorder %s1150_s13, %s899_s9  ;;  %p907_p1 = scmp.lt.s32.totalorder %s905_s16, %s899_s9 }
  0x1f   : > { %303 = vperm.xlu0 %896, %v301_v4  }
  0x20   : > { %849 = vmatpush3.bf16.msra.mxu0 %v848_v47  ;;  %p901_p12 = pnand %p900_p11, %p1048_p5  ;;  %p908_p2 = por %p907_p1, %p906_p0 }
  0x22   : > { %p902_p13 = pneg %p901_p12 }
  0x23   : > { %898 = vset.pattern.permute.xlu0 %v964_v1 }
  0x24   : > { %p909_p3 = pnand %p908_p2, %p902_p13 }
  0x99   : > { %v296_v14 = vpop.permute.xlu0 %295 }
  0x9a   : > { %vm297_vm2 = vcmp.eq.s32.totalorder %v296_v14, %v293_v13 }
  0x9b   : > { %v312_v15 = vpop.permute.xlu1 %311  ;;  %v745_v19 = vsel %vm297_vm2, 1.0, %v967_v10 }
  0x9c   : > { %vm313_vm3 = vcmp.eq.s32.totalorder %v312_v15, %v293_v13 }
  0x9d   : > { %v747_v21 = vsel %vm313_vm3, 1.0, %v967_v10 }
  0x9e   : > { %v304_v16 = vpop.permute.xlu0 %303 }
  0x9f   : > { %vm305_vm4 = vcmp.eq.s32.totalorder %v304_v16, %v293_v13 }
  0xa0   : > { %v746_v20 = vsel %vm305_vm4, 1.0, %v967_v10 }
  0xa1   : > { %v308_v22 = vadd.f32 %v746_v20, %v745_v19 }
  0xa3   : > { %v316_v24 = vadd.f32 %v747_v21, %v308_v22 }
  0xa5   : > { %787 = vmatmul.mubr.msk.f32.vlgmr.msra.gmra.mrb[0].mxu1 %vm320_vm5, %v316_v24 }
  0xa6   : > { %831 = vmatpush3.bf16.msra.mxu1 %v830_v23  ;;  %793 = vmatprep.mubr.msk.f32.mxu1 %vm968_vm1, %v967_v10 }
  0xa7   : > { %832 = vmatprep.subr.bf16.mxu1 %v966_v9 }
  0xa9   : > { %794 = vmatmul.mubr.msk.f32.vlgmr.msra.gmra.mrb[2].mxu1 %vm405_vm6, %v404_v27 }
  0xaa   : > { %834 = vmatpush3.bf16.msra.mxu1 %v833_v28  ;;  %804 = vmatprep.mubr.msk.f32.mxu1 %vm968_vm1, %v967_v10 }
  0xab   : > { %835 = vmatprep.subr.bf16.mxu1 %v966_v9 }
  0xae   : > { %837 = vmatpush3.bf16.msra.mxu1 %v836_v31 }
 0x178   : > { %v394_v38 = vpop.f32.mrb[0].mxu1 }
 0x179   : > { %v788_v39 = vpop.f32.mrb[1].mxu1  ;;  %805 = vmatmul.mubr.msk.f32.vlgmr.msra.gmra.mrb[4].mxu1 %vm479_vm7, %v394_v38 }
 0x17c   : > { %v475_v40 = vpop.f32.mrb[2].mxu1 }
 0x17d   : > { %v795_v41 = vpop.f32.mrb[3].mxu1 }
 0x24c   : > { %v549_v48 = vpop.f32.mrb[4].mxu1 }
 0x24d   : > { %v550_v50 = vadd.f32 %v549_v48, %v475_v40  ;;  %v806_v51 = vpop.f32.mrb[5].mxu1 }
 0x24f   : > { %v560_v52 = vadd.f32 %v752_v49, %v550_v50 }
 0x251   : > { %v561_v53 = vmax.f32 %v560_v52, 0.0 }
 0x253   : > { %824 = vmatmul.mubr.msk.f32.vlgmr.msra.gmra.mrb[0].mxu0 %vm577_vm8, %v561_v53 }
 0x326   : > { %v647_v55 = vpop.f32.mrb[0].mxu0 }
 0x327   : > { %v648_v56 = vadd.f32 %v753_v54, %v647_v55  ;;  %v825_v57 = vpop.f32.mrb[1].mxu0 }
 0x329   : > { %v651_v58 = vmax.f32 %v648_v56, 0.0 }
 0x32b   : > { %652 = vst.msk [vmem:[%s282_s22] sm:$0xff] %vm479_vm7, %v651_v58 }
 0x32c   : > { %912 = shalt.err (!%p909_p3)
}
 0x32d   : > { %s913_s17 = scalar_lea.hbm %s1148_s29, 128  ;;  %s917_s20 = scalar_lea.hbm %s1198_s7, 384 }
 0x32e   : > { %p914_p4 = scmp.ne.s32.totalorder %s1148_s29, %s913_s17  ;;  %p918_p9 = scmp.lt.u32.totalorder %s1148_s29, %s1198_s7 }
 0x32f   : > { %p919_p10 = scmp.lt.u32.totalorder %s917_s20, %s913_s17  ;;  %p921_p12 = scmp.lt.u32.totalorder %s913_s17, %s1148_s29 }
 0x330   : > { %p915_p7 = pnand %p914_p4, %p1048_p5 }
 0x331   : > { %p920_p11 = por %p919_p10, %p918_p9 }
 0x332   : > { %p916_p8 = pneg %p915_p7 }
 0x333   : > { %p922_p13 = por %p921_p12, %p920_p11 }
 0x335   : > { %p923_p0 = pnand %p922_p13, %p916_p8 }
 0x337   : > { %926 = shalt.err (!%p923_p0)
}
 0x338   : > { %850 = dma.vmem_to_hbm [thread:$0]  (%p1048_p5), %s1150_s13, 128, %s1148_s29, %s654_s8  }
 0x339 PF: > { %p856_p1 = scmp.ge.s32.totalorder %s961_s27, 2  ;;  %s679_s14 = sand.u32 1, %s949_s24  }
 0x33a   : > { %s680_s23 = scalar_lea.sflag [#allocation3], %s679_s14 }
 0x33b   : > { %p853_p2 = pnand %p856_p1, %p1052_p6 }
 0x33d   : > { %944 = dma.done.wait (!%p853_p2), %s680_s23, 128  }
 0x33e   : > { %946 = vsyncadd (!%p853_p2), %s680_s23, 4294967168  ;;  %p17_p3 = scmp.ge.s32.totalorder %s1035_s30, 5   ;;  %s1201_s24 = smov %s953_s25 }
 0x33f   : > { %s1202_s25 = smov %s957_s26  ;;  %s1203_s26 = smov %s1046_s10 }
 0x340   : > { %s1204_s27 = smov %s1035_s30  ;;  %19 = sbr.rel (!%p17_p3) target bundleno = 3 (0x3), region = 86 }
 0x347   :  { %685 = vsyncpa [#allocation3], 1 }
 0x348   :  { %687 = vsyncpa [#allocation3 + $0x1], 1 }

</bundles_post_ra>
